<compile_context>
chip_gen: v6e
topology: v6e:2x2x1
jax: 0.10.0
libtpu: 0.0.40
codegen_flags: <defaults>
</compile_context>

<pallas_src>
import functools

import jax
import jax.numpy as jnp
from jax.experimental import pallas as pl
from jax.experimental.pallas import tpu as pltpu


def _round_up(x, m):
    return ((x + m - 1) // m) * m


def _sublane_multiple(dtype):
    # 8 sublanes of 32-bit; sub-32-bit dtypes pack along sublanes.
    return max(8, 32 // jnp.dtype(dtype).itemsize)  # f32->8, bf16->16, int8/fp8->32


# ----------------------------------------------------------------------------
# Kernels
# ----------------------------------------------------------------------------
def _linear_kernel_single_k(x_ref, w_ref, b_ref, o_ref):
    # Whole reduction fits one K tile: no scratch, no extra acc->out copy.
    acc = jnp.dot(x_ref[...], w_ref[...], preferred_element_type=jnp.float32)
    o_ref[...] = (acc + b_ref[...].astype(jnp.float32)).astype(o_ref.dtype)


def _linear_kernel_multi_k(x_ref, w_ref, b_ref, o_ref, acc_ref):
    k = pl.program_id(2)

    @pl.when(k == 0)
    def _init():
        # Fold the bias into the accumulator init (one VPU broadcast per tile).
        acc_ref[...] = jnp.broadcast_to(
            b_ref[...].astype(jnp.float32), acc_ref.shape
        )

    acc_ref[...] += jnp.dot(
        x_ref[...], w_ref[...], preferred_element_type=jnp.float32
    )

    @pl.when(k == pl.num_programs(2) - 1)
    def _finalize():
        o_ref[...] = acc_ref[...].astype(o_ref.dtype)


# ----------------------------------------------------------------------------
# Tiling plans
# ----------------------------------------------------------------------------
def _plan_nk(d_in, d_out, *, tn=1024, tk=512):
    """N/K tiling depends only on (D_in, D_out) so weights can be pre-padded once."""
    tk = min(tk, _round_up(d_in, 128))
    tn = min(tn, _round_up(d_out, 128))
    # Megacore: ensure >= 2 output-column tiles when D_out would otherwise be a
    # single tile, so v7x's second TensorCore gets work even at small batch.
    if _round_up(d_out, tn) // tn == 1 and tn >= 256:
        tn = _round_up(tn // 2, 128)
    kp = _round_up(d_in, tk)
    np_ = _round_up(d_out, tn)
    return tn, tk, np_, kp


def _plan_m(batch, sub, *, tm_max=512):
    """Adaptive M tile: dtype-aware sublane rounding, minimal round-up waste."""
    if batch <= tm_max:
        return _round_up(batch, sub)
    best_tm, best_mp = None, None
    for cand in (512, 384, 256, 128):
        mp = _round_up(batch, cand)
        if best_mp is None or mp < best_mp or (mp == best_mp and cand > best_tm):
            best_tm, best_mp = cand, mp
    return best_tm


# ----------------------------------------------------------------------------
# Parameter preparation (one-time: pad + transpose + cast the weight stream)
# ----------------------------------------------------------------------------
def prepare_params(weight, bias, *, compute_dtype=jnp.bfloat16, tn=1024, tk=512):
    """weight: (D_out, D_in) PyTorch layout; bias: (D_out,) or (1, D_out)."""
    d_out, d_in = weight.shape
    tn, tk, np_, kp = _plan_nk(d_in, d_out, tn=tn, tk=tk)

    w_t = jnp.transpose(weight)                                   # (D_in, D_out)
    w_p = jnp.pad(w_t, ((0, kp - d_in), (0, np_ - d_out)))
    if compute_dtype is not None:
        w_p = w_p.astype(compute_dtype)
    b2 = jnp.reshape(bias, (1, d_out)).astype(jnp.float32)
    b_p = jnp.pad(b2, ((0, 0), (0, np_ - d_out)))

    return dict(w=w_p, b=b_p, d_in=d_in, d_out=d_out, tn=tn, tk=tk,
                compute_dtype=compute_dtype)


# ----------------------------------------------------------------------------
# Forward
# ----------------------------------------------------------------------------
@functools.partial(
    jax.jit, static_argnames=("d_out", "tn", "tk", "tm", "compute_dtype"))
def _lregression_forward(x, w_p, b_p, *, d_out, tn, tk, tm, compute_dtype):
    batch, d_in = x.shape
    kp, np_ = w_p.shape
    out_dtype = x.dtype

    mp = _round_up(batch, tm)
    x_p = jnp.pad(x, ((0, mp - batch), (0, kp - d_in)))
    if compute_dtype is not None:
        x_p = x_p.astype(compute_dtype)

    grid_m, grid_n, grid_k = mp // tm, np_ // tn, kp // tk

    # Size the scoped VMEM limit from the actual footprint (double-buffered inputs
    # and output + f32 acc), capped at 48 MiB so it is safe on v7x's 64 MiB VMEM.
    in_sz = jnp.dtype(x_p.dtype).itemsize
    out_sz = jnp.dtype(out_dtype).itemsize
    footprint = (2 * (tm * tk * in_sz + tk * tn * in_sz + tn * 4
                      + tm * tn * out_sz) + tm * tn * 4)
    vmem_limit = int(min(max(32 << 20, 2 * footprint), 48 << 20))

    if grid_k == 1:
        out = pl.pallas_call(
            _linear_kernel_single_k,
            out_shape=jax.ShapeDtypeStruct((mp, np_), out_dtype),
            grid_spec=pltpu.PrefetchScalarGridSpec(
                num_scalar_prefetch=0,
                grid=(grid_m, grid_n),
                in_specs=[
                    pl.BlockSpec((tm, tk), lambda i, j: (i, 0)),
                    pl.BlockSpec((tk, tn), lambda i, j: (0, j)),
                    pl.BlockSpec((1, tn), lambda i, j: (0, j)),
                ],
                out_specs=pl.BlockSpec((tm, tn), lambda i, j: (i, j)),
            ),
            compiler_params=pltpu.CompilerParams(
                dimension_semantics=("parallel", "parallel"),
                vmem_limit_bytes=vmem_limit,
            ),
        )(x_p, w_p, b_p)
    else:
        out = pl.pallas_call(
            _linear_kernel_multi_k,
            out_shape=jax.ShapeDtypeStruct((mp, np_), out_dtype),
            grid_spec=pltpu.PrefetchScalarGridSpec(
                num_scalar_prefetch=0,
                grid=(grid_m, grid_n, grid_k),
                in_specs=[
                    pl.BlockSpec((tm, tk), lambda i, j, k: (i, k)),
                    pl.BlockSpec((tk, tn), lambda i, j, k: (k, j)),
                    pl.BlockSpec((1, tn), lambda i, j, k: (0, j)),
                ],
                out_specs=pl.BlockSpec((tm, tn), lambda i, j, k: (i, j)),
                scratch_shapes=[pltpu.VMEM((tm, tn), jnp.float32)],
            ),
            compiler_params=pltpu.CompilerParams(
                dimension_semantics=("parallel", "parallel", "arbitrary"),
                vmem_limit_bytes=vmem_limit,
            ),
        )(x_p, w_p, b_p)

    return out[:batch, :d_out]


def lregression_forward(x, params):
    """x: (B, D_in) -> (B, D_out), using pre-padded params from prepare_params()."""
    cd = params["compute_dtype"]
    sub = _sublane_multiple(cd if cd is not None else x.dtype)
    tm = _plan_m(x.shape[0], sub)
    # If the whole problem is a single (tm, tn) tile and tm is large enough,
    # split M so both v7x TensorCores get work (no-op for tiny demos).
    np_ = params["w"].shape[1]
    if (np_ // params["tn"] == 1
            and _round_up(x.shape[0], tm) // tm == 1 and tm >= 256):
        tm = _round_up(tm // 2, sub)
    return _lregression_forward(
        x, params["w"], params["b"],
        d_out=params["d_out"], tn=params["tn"], tk=params["tk"], tm=tm,
        compute_dtype=cd)


# ----------------------------------------------------------------------------
# Demo / correctness check
# ----------------------------------------------------------------------------
if __name__ == "__main__":
    # Small shapes consistent with the module: batch=8, input_dim=32, output_dim=16.
    batch, input_dim, output_dim = 8, 32, 16

    key = jax.random.PRNGKey(0)
    kx, kw, kb = jax.random.split(key, 3)

    # nn.Linear init: weight (out, in), bias (out,), both U(-1/sqrt(in), 1/sqrt(in)).
    bound = 1.0 / (input_dim ** 0.5)
    weight = jax.random.uniform(kw, (output_dim, input_dim), jnp.float32,
                                minval=-bound, maxval=bound)
    bias = jax.random.uniform(kb, (output_dim,), jnp.float32,
                              minval=-bound, maxval=bound)
    x = jax.random.normal(kx, (batch, input_dim), jnp.float32)

    y_ref = x @ weight.T + bias

    # Default path: bf16 operand streams, f32 accumulation.
    params = prepare_params(weight, bias)
    y = lregression_forward(x, params)
    jax.block_until_ready(y)
    assert y.shape == (batch, output_dim)
    # bf16 operands -> loosened tolerance (expected quantization error).
    assert jnp.allclose(y, y_ref, atol=2e-2, rtol=2e-2)

    # Exact f32 path.
    params_f32 = prepare_params(weight, bias, compute_dtype=None)
    y32 = lregression_forward(x, params_f32)
    jax.block_until_ready(y32)
    assert jnp.allclose(y32, y_ref, atol=1e-5, rtol=1e-5)

    print("KERNEL_OK")
</pallas_src>

<mosaic_0001>
module attributes {stable_mosaic.version = 11 : i64} {
  func.func @_linear_kernel_single_k(%arg0: i32, %arg1: i32, %arg2: memref<16x128xbf16, #tpu.memory_space<vmem>>, %arg3: memref<128x128xbf16, #tpu.memory_space<vmem>>, %arg4: memref<1x128xf32, #tpu.memory_space<vmem>>, %arg5: memref<16x128xf32, #tpu.memory_space<vmem>>) attributes {dimension_semantics = [#tpu.dimension_semantics<parallel>, #tpu.dimension_semantics<parallel>], iteration_bounds = array<i64: 1, 1>, scalar_prefetch = 0 : i64, scratch_operands = 0 : i64, tpu.core_type = #tpu.core_type<tc>, window_params = [{transform_indices = @transform_0, window_bounds = array<i64: 16, 128>}, {transform_indices = @transform_1, window_bounds = array<i64: 128, 128>}, {transform_indices = @transform_2, window_bounds = array<i64: 1, 128>}, {transform_indices = @transform_3, window_bounds = array<i64: 16, 128>}]} {
    %c0 = arith.constant 0 : index
    %c0_0 = arith.constant 0 : index
    %0 = vector.load %arg2[%c0, %c0_0] : memref<16x128xbf16, #tpu.memory_space<vmem>>, vector<16x128xbf16>
    %c0_1 = arith.constant 0 : index
    %c0_2 = arith.constant 0 : index
    %1 = vector.load %arg3[%c0_1, %c0_2] : memref<128x128xbf16, #tpu.memory_space<vmem>>, vector<128x128xbf16>
    %cst = arith.constant dense<0.000000e+00> : vector<16x128xf32>
    %2 = tpu.matmul %0, %1, %cst {dimension_numbers = #tpu.dot_dimension_numbers<[1], [0], [0], [1], [0, 0, 1, 1], [], []>} : vector<16x128xbf16>, vector<128x128xbf16>, vector<16x128xf32> -> vector<16x128xf32>
    %c0_3 = arith.constant 0 : index
    %c0_4 = arith.constant 0 : index
    %3 = vector.load %arg4[%c0_3, %c0_4] : memref<1x128xf32, #tpu.memory_space<vmem>>, vector<1x128xf32>
    %4 = vector.broadcast %3 : vector<1x128xf32> to vector<16x128xf32>
    %5 = arith.addf %2, %4 : vector<16x128xf32>
    %c0_5 = arith.constant 0 : index
    %c0_6 = arith.constant 0 : index
    %6 = vector.load %arg5[%c0_5, %c0_6] : memref<16x128xf32, #tpu.memory_space<vmem>>, vector<16x128xf32>
    tpu.vector_store %arg5[%c0_5, %c0_6], %5 {strides = array<i32>} : memref<16x128xf32, #tpu.memory_space<vmem>>, vector<16x128xf32>,
    return
  }
  func.func @transform_0(%arg0: i32, %arg1: i32) -> (i32, i32) {
    %c0_i32 = arith.constant 0 : i32
    %c0_i32_0 = arith.constant 0 : i32
    return %arg0, %c0_i32 : i32, i32
  }
  func.func @transform_1(%arg0: i32, %arg1: i32) -> (i32, i32) {
    %c0_i32 = arith.constant 0 : i32
    %c0_i32_0 = arith.constant 0 : i32
    return %c0_i32, %arg1 : i32, i32
  }
  func.func @transform_2(%arg0: i32, %arg1: i32) -> (i32, i32) {
    %c0_i32 = arith.constant 0 : i32
    %c0_i32_0 = arith.constant 0 : i32
    return %c0_i32, %arg1 : i32, i32
  }
  func.func @transform_3(%arg0: i32, %arg1: i32) -> (i32, i32) {
    %c0_i32 = arith.constant 0 : i32
    return %arg0, %arg1 : i32, i32
  }
}

</mosaic_0001>

<bundles_post_ra>
// kernel: _lregression_forward.1
= control target key start
LH: loop header
LB: loop body
LE: loop exit
PB: predicated region body
PF: predicated region fallthrough
CT: control target
= control target key end

     0   :  { %8 = vsyncpa [#allocation3], 0  ;;  %s231_s12 = smov [#allocation2]   ;;  %s271_s0 = inlined_call_operand.vmem [shape: bf16[16,128], index: 0, kind: input, shape index: {}]   ;;  %s272_s1 = inlined_call_operand.hbm [shape: bf16[128,128], index: 1, kind: input, shape index: {}]   ;;  %s273_s2 = inlined_call_operand.vmem [shape: f32[1,128], index: 2, kind: input, shape index: {}]   ;;  %s274_s3 = inlined_call_operand.vmem [shape: f32[16,128], index: 3, kind: output, shape index: {}]  }
   0x1   :  { %s16_s13 = sshll.u32 %s231_s12, 4  ;;  %s17_s13 = int_to_ptr.vmem [resolvable:$true] %s16_s13 }
   0x2   :  { %s217_s14 = scalar_lea.vmem %s17_s13, 1024  ;;  %p222_p1 = scmp.lt.s32.totalorder %s17_s13, %s17_s13 }
   0x3   :  { %p218_p0 = scmp.ne.s32.totalorder %s17_s13, %s217_s14  ;;  %p223_p2 = scmp.lt.s32.totalorder %s217_s14, %s217_s14 }
   0x5   :  { %p224_p3 = por %p223_p2, %p222_p1 }
   0x7   :  { %p225_p4 = pnand %p224_p3, %p218_p0 }
   0x9   :  { %228 = shalt.err (!%p225_p4)
}
   0xa   :  { %s232_s15 = smov 64   ;;  %s233_s16 = smov 4  }
   0xb   :  { %22 = dma.hbm_to_vmem [thread:$0]  %s272_s1, 1024, %s17_s13, [#allocation3], %s232_s15, %s232_s15, %s233_s16  }
   0xc   :  { %229 = dma.done.wait [#allocation3], 1024  }
   0xd   :  { %230 = vsyncadd [#allocation3], 4294966272  ;;  %v234_v0 = vmov 0.0   ;;  %vm235_vm0 = vmmov 0   ;;  %v200_v1 = vld [vmem:[#allocation2 + $0x38] sm:$0xff]   ;;  %v201_v2 = vld [vmem:[#allocation2 + $0x30] sm:$0xff]  }
   0xe   :  { %175 = vmatprep.subr.bf16.mxu0 %v234_v0  ;;  %191 = vmatprep.mubr.msk.bf16.mxu0 %vm235_vm0, %v234_v0  ;;  %v202_v3 = vld [vmem:[#allocation2 + $0x28] sm:$0xff]   ;;  %v203_v4 = vld [vmem:[#allocation2 + $0x20] sm:$0xff]   ;;  %v204_v5 = vld [vmem:[#allocation2 + $0x18] sm:$0xff]  }
   0xf   :  { %176 = vmatpush3.bf16.msra.mxu0 %v200_v1  ;;  %v205_v6 = vld [vmem:[#allocation2 + $0x10] sm:$0xff]   ;;  %v206_v7 = vld [vmem:[#allocation2 + $0x8] sm:$0xff]   ;;  %v207_v8 = vld [vmem:[#allocation2] sm:$0xff]  }
  0x10   :  { %177 = vmatprep.subr.bf16.mxu0 %v234_v0  ;;  %v208_v9 = vld [vmem:[%s271_s0] sm:$0xff]  }
  0x11   :  { %v156_v10 = vld [vmem:[%s273_s2] ss:$0 sm:$0xff] }
  0x13   :  { %178 = vmatpush3.bf16.msra.mxu0 %v201_v2 }
  0x14   :  { %179 = vmatprep.subr.bf16.mxu0 %v234_v0 }
  0x17   :  { %180 = vmatpush3.bf16.msra.mxu0 %v202_v3 }
  0x18   :  { %181 = vmatprep.subr.bf16.mxu0 %v234_v0 }
  0x1b   :  { %182 = vmatpush3.bf16.msra.mxu0 %v203_v4 }
  0x1c   :  { %183 = vmatprep.subr.bf16.mxu0 %v234_v0 }
  0x1f   :  { %184 = vmatpush3.bf16.msra.mxu0 %v204_v5 }
  0x20   :  { %185 = vmatprep.subr.bf16.mxu0 %v234_v0 }
  0x23   :  { %186 = vmatpush3.bf16.msra.mxu0 %v205_v6 }
  0x24   :  { %187 = vmatprep.subr.bf16.mxu0 %v234_v0 }
  0x27   :  { %188 = vmatpush3.bf16.msra.mxu0 %v206_v7 }
  0x28   :  { %189 = vmatprep.subr.bf16.mxu0 %v234_v0 }
  0x2b   :  { %190 = vmatpush3.bf16.msra.mxu0 %v207_v8 }
  0x2e   :  { %192 = vmatmul.mubr.bf16.vlgmr.msra.gmra.mxu0 %v208_v9 }
  0xee   :  { %v142_v11 = vpop.f32.mrf.mxu0 }
  0xef   :  { %v143_v12 = vadd.f32 %v156_v10, %v142_v11 }
  0xf0   :  { %v193_v13 = vpop.f32.mrf.mxu0 }
  0xf1   :  { %149 = vst [vmem:[%s274_s3] sm:$0xff] %v143_v12 }
  0xf2   :  { %v145_v14 = vpop.f32.mrf.mxu0 }
  0xf3   :  { %v146_v15 = vadd.f32 %v156_v10, %v145_v14 }
  0xf4   :  { %v194_v16 = vpop.f32.mrf.mxu0 }
  0xf5   :  { %150 = vst [vmem:[%s274_s3 + $0x8] sm:$0xff] %v146_v15 }
  0xf6   :  { %155 = vsyncpa [#allocation3], 1 }

</bundles_post_ra>
